<compile_context>
chip_gen: v6e
topology: v6e:2x2x1
jax: 0.10.0
libtpu: 0.0.40
codegen_flags: <defaults>
</compile_context>

<pallas_src>
import functools

import jax
import jax.numpy as jnp
from jax import lax
from jax.experimental import pallas as pl
from jax.experimental.pallas import tpu as pltpu


MAX_TILE = 1024  # lane-dense pair-matrix tile (falls back to 128-multiple for small N)


def _round_up(x, m):
    return ((x + m - 1) // m) * m


def _choose_tile(n):
    return max(128, min(MAX_TILE, _round_up(n, 128)))


def _pairwise_mse_bce_kernel(bi_tbl, bj_tbl,              # scalar prefetch (SMEM)
                             d_col_ref, d_row_ref,         # d = pred - logit(psi)
                             p_col_ref, p_row_ref,         # psi (pad entries = NaN)
                             x_row_ref,                     # pred logits (for BCE)
                             sq_out_ref, cnt_out_ref, bce_out_ref,
                             acc_sq, acc_cnt, acc_bce,
                             *, tile, thr, n, nt, nt_half, has_pad):
    c = pl.program_id(0)               # "parallel" half of the flat block list
    t = pl.program_id(1)               # position inside that half ("arbitrary")
    flat = c * nt_half + t
    bi = bi_tbl[flat]
    bj = bj_tbl[flat]
    is_active = flat < nt              # guards the (at most one) padded grid step
    is_diag = bi == bj

    @pl.when(t == 0)
    def _init():
        acc_sq[...] = jnp.zeros_like(acc_sq)
        acc_cnt[...] = jnp.zeros_like(acc_cnt)
        acc_bce[...] = jnp.zeros_like(acc_bce)

    # O(N^2) pairwise part.  Padded psi is NaN, so the threshold compare alone
    # rejects every pair that touches padding.  Strictly-upper blocks carry
    # weight 2 (their mirrored lower-triangle block is never visited); diagonal
    # blocks are summed over all of their ordered pairs with weight 1.
    @pl.when(is_active)
    def _pairwise():
        valid = jnp.abs(p_col_ref[...] - p_row_ref[...]) >= thr    # (tile, tile)
        dd = d_col_ref[...] - d_row_ref[...]                       # pred_diff - true_diff
        w = jnp.where(is_diag, 1.0, 2.0).astype(jnp.float32)
        # Sublane (axis 0) reductions feed tiny (1, tile) accumulators; the XLU
        # is otherwise idle here and the (TILE,TILE) accumulator traffic is gone.
        acc_sq[...] += w * jnp.sum(jnp.where(valid, dd * dd, 0.0),
                                   axis=0, keepdims=True)
        acc_cnt[...] += w * jnp.sum(valid.astype(jnp.float32),
                                    axis=0, keepdims=True)

    # O(N) stable BCE-with-logits terms, accumulated once per column block
    # (only the bi == 0 row of blocks).
    @pl.when(is_active & (bi == 0))
    def _bce():
        x = x_row_ref[...]             # (1, tile) logits
        y = p_row_ref[...]             # (1, tile) targets (NaN on padding)
        b = jnp.maximum(x, 0.0) - x * y + jnp.log1p(jnp.exp(-jnp.abs(x)))
        if has_pad:
            c_ids = lax.broadcasted_iota(jnp.int32, (1, tile), 1) + bj * tile
            b = jnp.where(c_ids < n, b, 0.0)   # select (not multiply): pads are NaN
        acc_bce[...] += b

    @pl.when(t == nt_half - 1)
    def _finalize():
        sq_out_ref[...] = jnp.full(sq_out_ref.shape, jnp.sum(acc_sq[...]),
                                   dtype=jnp.float32)
        cnt_out_ref[...] = jnp.full(cnt_out_ref.shape, jnp.sum(acc_cnt[...]),
                                    dtype=jnp.float32)
        bce_out_ref[...] = jnp.full(bce_out_ref.shape, jnp.sum(acc_bce[...]),
                                    dtype=jnp.float32)


def _bce_only_kernel(x_ref, y_ref, out_ref, acc, *, tile, n, has_pad):
    j = pl.program_id(0)

    @pl.when(j == 0)
    def _init():
        acc[...] = jnp.zeros_like(acc)

    x = x_ref[...]
    y = y_ref[...]
    b = jnp.maximum(x, 0.0) - x * y + jnp.log1p(jnp.exp(-jnp.abs(x)))
    if has_pad:
        c_ids = lax.broadcasted_iota(jnp.int32, (1, tile), 1) + j * tile
        b = jnp.where(c_ids < n, b, 0.0)
    acc[...] += b

    @pl.when(j == pl.num_programs(0) - 1)
    def _finalize():
        out_ref[...] = jnp.full(out_ref.shape, jnp.sum(acc[...]), dtype=jnp.float32)


def _bce_only_mean(pred, psi):
    """O(N) BCE-with-logits mean (fast path: the O(N^2) pairwise grid never runs)."""
    n = pred.shape[0]
    tile = _choose_tile(n)
    n_pad = _round_up(n, tile)
    pad = n_pad - n
    nb = n_pad // tile
    x = jnp.pad(pred, (0, pad)).reshape(1, n_pad)
    y = jnp.pad(psi, (0, pad)).reshape(1, n_pad)
    kernel = functools.partial(_bce_only_kernel, tile=tile, n=n, has_pad=pad > 0)
    out = pl.pallas_call(
        kernel,
        out_shape=jax.ShapeDtypeStruct((8, 128), jnp.float32),
        grid_spec=pltpu.PrefetchScalarGridSpec(
            num_scalar_prefetch=0,
            grid=(nb,),
            in_specs=[pl.BlockSpec((1, tile), lambda j: (0, j)),
                      pl.BlockSpec((1, tile), lambda j: (0, j))],
            out_specs=pl.BlockSpec((8, 128), lambda j: (0, 0)),
            scratch_shapes=[pltpu.VMEM((1, tile), jnp.float32)]),
        compiler_params=pltpu.CompilerParams(
            dimension_semantics=("arbitrary",)),
    )(x, y)
    return out[0, 0] / jnp.float32(n)


def all_examples_pairwise_mse_and_bce_with_logits_loss(
        pred_psi_val, psi_val, *, dPSI_threshold,
        mse_loss_weight_multiplier=10.0, use_BCE_loss_only=False):
    """Forward pass of AllExamplesPairwiseMSELossAndBCEWithLogitsLoss -> scalar f32.

    dPSI_threshold is baked into the kernel as a static constant (it is a fixed
    module hyper-parameter; a new value triggers a recompile).
    """
    pred = jnp.asarray(pred_psi_val, jnp.float32).reshape(-1)
    psi = jnp.asarray(psi_val, jnp.float32).reshape(-1)
    n = pred.shape[0]

    if use_BCE_loss_only:
        return _bce_only_mean(pred, psi)

    tile = _choose_tile(n)
    n_pad = _round_up(n, tile)
    pad = n_pad - n
    nb = n_pad // tile

    pred_p = jnp.pad(pred, (0, pad))
    # Pad psi with NaN: every comparison with NaN is false, so the single
    # |dpsi| >= thr test rejects all pairs that touch padding (no pad masks in
    # the pairwise path).  The squared errors on those lanes are dropped by the
    # jnp.where select, so the NaNs never reach the accumulators.
    psi_p = jnp.pad(psi, (0, pad), constant_values=jnp.nan)

    # d_k = pred_k - logit(psi_k)   (torch.special.logit with eps = 1e-7)
    eps = 1e-7
    pc = jnp.clip(psi_p, eps, 1.0 - eps)
    d = pred_p - jnp.log(pc / (1.0 - pc))      # NaN on padding (always masked)

    d_col = d.reshape(n_pad, 1)
    d_row = d.reshape(1, n_pad)
    p_col = psi_p.reshape(n_pad, 1)
    p_row = psi_p.reshape(1, n_pad)
    x_row = pred_p.reshape(1, n_pad)

    # Flat upper-triangular block list (bi-major so the (tile,1) column blocks
    # stay resident across consecutive steps), split into two count-balanced
    # halves for the leading "parallel" (TensorCore) grid axis.
    blocks = [(i, j) for i in range(nb) for j in range(i, nb)]
    nt = len(blocks)
    nt_half = (nt + 1) // 2
    blocks = blocks + [(0, 0)] * (2 * nt_half - nt)   # padded step, skipped in-kernel
    bi_tbl = jnp.asarray([b[0] for b in blocks], dtype=jnp.int32)
    bj_tbl = jnp.asarray([b[1] for b in blocks], dtype=jnp.int32)

    kernel = functools.partial(
        _pairwise_mse_bce_kernel, tile=tile, thr=float(dPSI_threshold), n=n,
        nt=nt, nt_half=nt_half, has_pad=pad > 0)

    def col_map(c, t, bi_t, bj_t):
        return (bi_t[c * nt_half + t], 0)

    def row_map(c, t, bi_t, bj_t):
        return (0, bj_t[c * nt_half + t])

    def out_map(c, t, bi_t, bj_t):
        return (c, 0, 0)

    grid_spec = pltpu.PrefetchScalarGridSpec(
        num_scalar_prefetch=2,
        grid=(2, nt_half),
        in_specs=[
            pl.BlockSpec((tile, 1), col_map),    # d column block
            pl.BlockSpec((1, tile), row_map),    # d row block
            pl.BlockSpec((tile, 1), col_map),    # psi column block
            pl.BlockSpec((1, tile), row_map),    # psi row block
            pl.BlockSpec((1, tile), row_map),    # pred row block (BCE)
        ],
        out_specs=(
            pl.BlockSpec((1, 8, 128), out_map),  # sq partial, one block per half
            pl.BlockSpec((1, 8, 128), out_map),  # cnt partial
            pl.BlockSpec((1, 8, 128), out_map),  # bce partial
        ),
        scratch_shapes=[
            pltpu.VMEM((1, tile), jnp.float32),  # acc_sq
            pltpu.VMEM((1, tile), jnp.float32),  # acc_cnt
            pltpu.VMEM((1, tile), jnp.float32),  # acc_bce
        ],
    )

    out_sq, out_cnt, out_bce = pl.pallas_call(
        kernel,
        out_shape=(
            jax.ShapeDtypeStruct((2, 8, 128), jnp.float32),
            jax.ShapeDtypeStruct((2, 8, 128), jnp.float32),
            jax.ShapeDtypeStruct((2, 8, 128), jnp.float32),
        ),
        grid_spec=grid_spec,
        compiler_params=pltpu.CompilerParams(
            dimension_semantics=("parallel", "arbitrary"),
            vmem_limit_bytes=48 * 1024 * 1024,
        ),
    )(bi_tbl, bj_tbl, d_col, d_row, p_col, p_row, x_row)

    bce_mean = jnp.sum(out_bce[:, 0, 0]) / jnp.float32(n)
    pair_sq = jnp.sum(out_sq[:, 0, 0])     # already covers ALL ordered pairs
    pair_cnt = jnp.sum(out_cnt[:, 0, 0])
    mse = jnp.where(pair_cnt > 0.0, pair_sq / jnp.maximum(pair_cnt, 1.0), 0.0)
    return bce_mean + jnp.float32(mse_loss_weight_multiplier) * mse


def _reference_loss(pred, psi, dPSI_threshold, mse_loss_weight_multiplier=10.0,
                    use_BCE_loss_only=False):
    """Pure-JAX mirror of the PyTorch module (sanity check)."""
    pred = jnp.asarray(pred, jnp.float32).reshape(-1)
    psi = jnp.asarray(psi, jnp.float32).reshape(-1)
    bce = jnp.mean(jnp.maximum(pred, 0.0) - pred * psi
                   + jnp.log1p(jnp.exp(-jnp.abs(pred))))
    if use_BCE_loss_only:
        return bce
    eps = 1e-7
    pc = jnp.clip(psi, eps, 1.0 - eps)
    lg = jnp.log(pc / (1.0 - pc))
    pred_diff = pred[:, None] - pred[None, :]
    true_diff = lg[:, None] - lg[None, :]
    ori_diff = psi[:, None] - psi[None, :]
    valid = jnp.abs(ori_diff) >= dPSI_threshold
    nvalid = jnp.sum(valid).astype(jnp.float32)
    se = jnp.where(valid, (pred_diff - true_diff) ** 2, 0.0)
    mse = jnp.where(nvalid > 0.0, jnp.sum(se) / jnp.maximum(nvalid, 1.0), 0.0)
    return bce + mse_loss_weight_multiplier * mse


def _check(name, got, ref, rtol, atol):
    if not jnp.allclose(got, ref, rtol=rtol, atol=atol):
        raise AssertionError(f"{name} mismatch: pallas={float(got)} ref={float(ref)}")


if __name__ == "__main__":
    key = jax.random.PRNGKey(0)
    k1, k2, k3, k4, k5, k6 = jax.random.split(key, 6)
    thr = 0.2
    mult = 10.0

    # 1) single small tile (pred are logits, psi are targets in [0, 1])
    n = 8
    pred = jax.random.normal(k1, (n,), dtype=jnp.float32)
    psi = jax.random.uniform(k2, (n,), dtype=jnp.float32)
    loss = jax.block_until_ready(all_examples_pairwise_mse_and_bce_with_logits_loss(
        pred, psi, dPSI_threshold=thr, mse_loss_weight_multiplier=mult))
    _check("small", loss, _reference_loss(pred, psi, thr, mult), 1e-4, 1e-4)

    # 2) BCE-only fast path (O(N) kernel, no pairwise grid)
    loss_bce = jax.block_until_ready(all_examples_pairwise_mse_and_bce_with_logits_loss(
        pred, psi, dPSI_threshold=thr, mse_loss_weight_multiplier=mult,
        use_BCE_loss_only=True))
    _check("bce_only", loss_bce, _reference_loss(pred, psi, thr, mult, True),
           1e-4, 1e-4)

    # 3) multi-block, odd triangular count (nb=2 -> one inactive padded grid step),
    #    NaN-padded tail, weight-2 off-diagonal blocks.
    n2 = 1300
    pred2 = jax.random.normal(k3, (n2,), dtype=jnp.float32)
    psi2 = jax.random.uniform(k4, (n2,), dtype=jnp.float32)
    loss2 = jax.block_until_ready(all_examples_pairwise_mse_and_bce_with_logits_loss(
        pred2, psi2, dPSI_threshold=thr, mse_loss_weight_multiplier=mult))
    _check("tiled_nb2", loss2, _reference_loss(pred2, psi2, thr, mult), 1e-3, 1e-3)

    # 4) nb=3 (even triangular count, both grid halves fully active).
    n3 = 2500
    pred3 = jax.random.normal(k5, (n3,), dtype=jnp.float32)
    psi3 = jax.random.uniform(k6, (n3,), dtype=jnp.float32)
    loss3 = jax.block_until_ready(all_examples_pairwise_mse_and_bce_with_logits_loss(
        pred3, psi3, dPSI_threshold=thr, mse_loss_weight_multiplier=mult))
    _check("tiled_nb3", loss3, _reference_loss(pred3, psi3, thr, mult), 1e-3, 1e-3)

    print("KERNEL_OK")
</pallas_src>

<mosaic_0001>
module attributes {stable_mosaic.version = 11 : i64} {
  func.func @_pairwise_mse_bce_kernel(%arg0: i32, %arg1: i32, %arg2: memref<2xi32, #tpu.memory_space<smem>>, %arg3: memref<2xi32, #tpu.memory_space<smem>>, %arg4: memref<128x1xf32, #tpu.memory_space<vmem>>, %arg5: memref<1x128xf32, #tpu.memory_space<vmem>>, %arg6: memref<128x1xf32, #tpu.memory_space<vmem>>, %arg7: memref<1x128xf32, #tpu.memory_space<vmem>>, %arg8: memref<1x128xf32, #tpu.memory_space<vmem>>, %arg9: memref<1x8x128xf32, #tpu.memory_space<vmem>>, %arg10: memref<1x8x128xf32, #tpu.memory_space<vmem>>, %arg11: memref<1x8x128xf32, #tpu.memory_space<vmem>>, %arg12: memref<1x128xf32, #tpu.memory_space<vmem>>, %arg13: memref<1x128xf32, #tpu.memory_space<vmem>>, %arg14: memref<1x128xf32, #tpu.memory_space<vmem>>) attributes {dimension_semantics = [#tpu.dimension_semantics<parallel>, #tpu.dimension_semantics<arbitrary>], iteration_bounds = array<i64: 2, 1>, scalar_prefetch = 2 : i64, scratch_operands = 3 : i64, tpu.core_type = #tpu.core_type<tc>, window_params = [{transform_indices = @transform_0, window_bounds = array<i64: 128, 1>}, {transform_indices = @transform_1, window_bounds = array<i64: 1, 128>}, {transform_indices = @transform_2, window_bounds = array<i64: 128, 1>}, {transform_indices = @transform_3, window_bounds = array<i64: 1, 128>}, {transform_indices = @transform_4, window_bounds = array<i64: 1, 128>}, {transform_indices = @transform_5, window_bounds = array<i64: 1, 8, 128>}, {transform_indices = @transform_6, window_bounds = array<i64: 1, 8, 128>}, {transform_indices = @transform_7, window_bounds = array<i64: 1, 8, 128>}]} {
    %c1_i32 = arith.constant 1 : i32
    %0 = arith.muli %arg0, %c1_i32 : i32
    %1 = arith.addi %0, %arg1 : i32
    %2 = arith.index_cast %1 : i32 to index
    %3 = memref.load %arg2[%2] : memref<2xi32, #tpu.memory_space<smem>>
    %4 = arith.index_cast %1 : i32 to index
    %5 = memref.load %arg3[%4] : memref<2xi32, #tpu.memory_space<smem>>
    %c1_i32_0 = arith.constant 1 : i32
    %6 = arith.cmpi slt, %1, %c1_i32_0 : i32
    %7 = arith.cmpi eq, %3, %5 : i32
    %c0_i32 = arith.constant 0 : i32
    %8 = arith.cmpi eq, %arg1, %c0_i32 : i32
    %9 = arith.extui %8 : i1 to i32
    %c0_i32_1 = arith.constant 0 : i32
    %10 = arith.cmpi ne, %9, %c0_i32_1 : i32
    scf.if %10 {
      %cst = arith.constant 0.000000e+00 : f32
      %20 = vector.broadcast %cst : f32 to vector<1x128xf32>
      %c0 = arith.constant 0 : index
      %c0_7 = arith.constant 0 : index
      %21 = vector.load %arg12[%c0, %c0_7] : memref<1x128xf32, #tpu.memory_space<vmem>>, vector<1x128xf32>
      tpu.vector_store %arg12[%c0, %c0_7], %20 {strides = array<i32>} : memref<1x128xf32, #tpu.memory_space<vmem>>, vector<1x128xf32>,
      %cst_8 = arith.constant 0.000000e+00 : f32
      %22 = vector.broadcast %cst_8 : f32 to vector<1x128xf32>
      %c0_9 = arith.constant 0 : index
      %c0_10 = arith.constant 0 : index
      %23 = vector.load %arg13[%c0_9, %c0_10] : memref<1x128xf32, #tpu.memory_space<vmem>>, vector<1x128xf32>
      tpu.vector_store %arg13[%c0_9, %c0_10], %22 {strides = array<i32>} : memref<1x128xf32, #tpu.memory_space<vmem>>, vector<1x128xf32>,
      %cst_11 = arith.constant 0.000000e+00 : f32
      %24 = vector.broadcast %cst_11 : f32 to vector<1x128xf32>
      %c0_12 = arith.constant 0 : index
      %c0_13 = arith.constant 0 : index
      %25 = vector.load %arg14[%c0_12, %c0_13] : memref<1x128xf32, #tpu.memory_space<vmem>>, vector<1x128xf32>
      tpu.vector_store %arg14[%c0_12, %c0_13], %24 {strides = array<i32>} : memref<1x128xf32, #tpu.memory_space<vmem>>, vector<1x128xf32>,
    } else {
    }
    %11 = arith.extui %6 : i1 to i32
    %c0_i32_2 = arith.constant 0 : i32
    %12 = arith.cmpi ne, %11, %c0_i32_2 : i32
    scf.if %12 {
      %c0 = arith.constant 0 : index
      %c0_7 = arith.constant 0 : index
      %20 = vector.load %arg6[%c0, %c0_7] : memref<128x1xf32, #tpu.memory_space<vmem>>, vector<128x1xf32>
      %c0_8 = arith.constant 0 : index
      %c0_9 = arith.constant 0 : index
      %21 = vector.load %arg7[%c0_8, %c0_9] : memref<1x128xf32, #tpu.memory_space<vmem>>, vector<1x128xf32>
      %22 = vector.broadcast %20 : vector<128x1xf32> to vector<128x128xf32>
      %23 = vector.broadcast %21 : vector<1x128xf32> to vector<128x128xf32>
      %24 = arith.subf %22, %23 : vector<128x128xf32>
      %25 = math.absf %24 : vector<128x128xf32>
      %cst = arith.constant 2.000000e-01 : f32
      %26 = vector.broadcast %cst : f32 to vector<128x128xf32>
      %27 = arith.cmpf oge, %25, %26 : vector<128x128xf32>
      %c0_10 = arith.constant 0 : index
      %c0_11 = arith.constant 0 : index
      %28 = vector.load %arg4[%c0_10, %c0_11] : memref<128x1xf32, #tpu.memory_space<vmem>>, vector<128x1xf32>
      %c0_12 = arith.constant 0 : index
      %c0_13 = arith.constant 0 : index
      %29 = vector.load %arg5[%c0_12, %c0_13] : memref<1x128xf32, #tpu.memory_space<vmem>>, vector<1x128xf32>
      %30 = vector.broadcast %28 : vector<128x1xf32> to vector<128x128xf32>
      %31 = vector.broadcast %29 : vector<1x128xf32> to vector<128x128xf32>
      %32 = arith.subf %30, %31 : vector<128x128xf32>
      %cst_14 = arith.constant 1.000000e+00 : f32
      %cst_15 = arith.constant 2.000000e+00 : f32
      %33 = arith.select %7, %cst_14, %cst_15 : f32
      %c0_16 = arith.constant 0 : index
      %c0_17 = arith.constant 0 : index
      %34 = vector.load %arg12[%c0_16, %c0_17] : memref<1x128xf32, #tpu.memory_space<vmem>>, vector<1x128xf32>
      %35 = arith.mulf %32, %32 : vector<128x128xf32>
      %cst_18 = arith.constant 0.000000e+00 : f32
      %36 = vector.broadcast %cst_18 : f32 to vector<128x128xf32>
      %37 = arith.select %27, %35, %36 : vector<128x128xi1>, vector<128x128xf32>
      %cst_19 = arith.constant dense<0.000000e+00> : vector<128xf32>
      %38 = vector.multi_reduction <add>, %37, %cst_19 [0] : vector<128x128xf32> to vector<128xf32>
      %39 = vector.shape_cast %38 : vector<128xf32> to vector<1x128xf32>
      %40 = vector.broadcast %33 : f32 to vector<1x128xf32>
      %41 = arith.mulf %40, %39 : vector<1x128xf32>
      %42 = arith.addf %34, %41 : vector<1x128xf32>
      %c0_20 = arith.constant 0 : index
      %c0_21 = arith.constant 0 : index
      %43 = vector.load %arg12[%c0_20, %c0_21] : memref<1x128xf32, #tpu.memory_space<vmem>>, vector<1x128xf32>
      tpu.vector_store %arg12[%c0_20, %c0_21], %42 {strides = array<i32>} : memref<1x128xf32, #tpu.memory_space<vmem>>, vector<1x128xf32>,
      %c0_22 = arith.constant 0 : index
      %c0_23 = arith.constant 0 : index
      %44 = vector.load %arg13[%c0_22, %c0_23] : memref<1x128xf32, #tpu.memory_space<vmem>>, vector<1x128xf32>
      %45 = arith.extui %27 : vector<128x128xi1> to vector<128x128xi32>
      %46 = arith.sitofp %45 : vector<128x128xi32> to vector<128x128xf32>
      %cst_24 = arith.constant dense<0.000000e+00> : vector<128xf32>
      %47 = vector.multi_reduction <add>, %46, %cst_24 [0] : vector<128x128xf32> to vector<128xf32>
      %48 = vector.shape_cast %47 : vector<128xf32> to vector<1x128xf32>
      %49 = vector.broadcast %33 : f32 to vector<1x128xf32>
      %50 = arith.mulf %49, %48 : vector<1x128xf32>
      %51 = arith.addf %44, %50 : vector<1x128xf32>
      %c0_25 = arith.constant 0 : index
      %c0_26 = arith.constant 0 : index
      %52 = vector.load %arg13[%c0_25, %c0_26] : memref<1x128xf32, #tpu.memory_space<vmem>>, vector<1x128xf32>
      tpu.vector_store %arg13[%c0_25, %c0_26], %51 {strides = array<i32>} : memref<1x128xf32, #tpu.memory_space<vmem>>, vector<1x128xf32>,
    } else {
    }
    %c0_i32_3 = arith.constant 0 : i32
    %13 = arith.cmpi eq, %3, %c0_i32_3 : i32
    %14 = arith.andi %6, %13 : i1
    %15 = arith.extui %14 : i1 to i32
    %c0_i32_4 = arith.constant 0 : i32
    %16 = arith.cmpi ne, %15, %c0_i32_4 : i32
    scf.if %16 {
      %c0 = arith.constant 0 : index
      %c0_7 = arith.constant 0 : index
      %20 = vector.load %arg8[%c0, %c0_7] : memref<1x128xf32, #tpu.memory_space<vmem>>, vector<1x128xf32>
      %c0_8 = arith.constant 0 : index
      %c0_9 = arith.constant 0 : index
      %21 = vector.load %arg7[%c0_8, %c0_9] : memref<1x128xf32, #tpu.memory_space<vmem>>, vector<1x128xf32>
      %cst = arith.constant 0.000000e+00 : f32
      %22 = vector.broadcast %cst : f32 to vector<1x128xf32>
      %23 = arith.maximumf %20, %22 : vector<1x128xf32>
      %24 = arith.mulf %20, %21 : vector<1x128xf32>
      %25 = arith.subf %23, %24 : vector<1x128xf32>
      %26 = math.absf %20 : vector<1x128xf32>
      %cst_10 = arith.constant 0.000000e+00 : f32
      %27 = vector.broadcast %cst_10 : f32 to vector<1x128xf32>
      %28 = arith.subf %27, %26 : vector<1x128xf32>
      %29 = math.exp %28 : vector<1x128xf32>
      %30 = math.log1p %29 : vector<1x128xf32>
      %31 = arith.addf %25, %30 : vector<1x128xf32>
      %32 = tpu.iota {dimensions = array<i32: 1>} : vector<1x128xi32>
      %c128_i32 = arith.constant 128 : i32
      %33 = arith.muli %5, %c128_i32 : i32
      %34 = vector.broadcast %33 : i32 to vector<1x128xi32>
      %35 = arith.addi %32, %34 : vector<1x128xi32>
      %c8_i32 = arith.constant 8 : i32
      %36 = vector.broadcast %c8_i32 : i32 to vector<1x128xi32>
      %37 = arith.cmpi slt, %35, %36 : vector<1x128xi32>
      %cst_11 = arith.constant 0.000000e+00 : f32
      %38 = vector.broadcast %cst_11 : f32 to vector<1x128xf32>
      %39 = arith.select %37, %31, %38 : vector<1x128xi1>, vector<1x128xf32>
      %c0_12 = arith.constant 0 : index
      %c0_13 = arith.constant 0 : index
      %40 = vector.load %arg14[%c0_12, %c0_13] : memref<1x128xf32, #tpu.memory_space<vmem>>, vector<1x128xf32>
      %41 = arith.addf %40, %39 : vector<1x128xf32>
      %c0_14 = arith.constant 0 : index
      %c0_15 = arith.constant 0 : index
      %42 = vector.load %arg14[%c0_14, %c0_15] : memref<1x128xf32, #tpu.memory_space<vmem>>, vector<1x128xf32>
      tpu.vector_store %arg14[%c0_14, %c0_15], %41 {strides = array<i32>} : memref<1x128xf32, #tpu.memory_space<vmem>>, vector<1x128xf32>,
    } else {
    }
    %c0_i32_5 = arith.constant 0 : i32
    %17 = arith.cmpi eq, %arg1, %c0_i32_5 : i32
    %18 = arith.extui %17 : i1 to i32
    %c0_i32_6 = arith.constant 0 : i32
    %19 = arith.cmpi ne, %18, %c0_i32_6 : i32
    scf.if %19 {
      %c0 = arith.constant 0 : index
      %c0_7 = arith.constant 0 : index
      %20 = vector.load %arg12[%c0, %c0_7] : memref<1x128xf32, #tpu.memory_space<vmem>>, vector<1x128xf32>
      %21 = vector.shape_cast %20 : vector<1x128xf32> to vector<1x1x128xf32>
      %cst = arith.constant dense<0.000000e+00> : vector<1xf32>
      %22 = vector.multi_reduction <add>, %21, %cst [1, 2] : vector<1x1x128xf32> to vector<1xf32>
      %23 = vector.shape_cast %22 : vector<1xf32> to vector<1x1x1xf32>
      %24 = vector.extract %23[0, 0, 0] : f32 from vector<1x1x1xf32>
      %25 = vector.broadcast %24 : f32 to vector<1x8x128xf32>
      %c0_8 = arith.constant 0 : index
      %c0_9 = arith.constant 0 : index
      %c0_10 = arith.constant 0 : index
      %26 = vector.load %arg9[%c0_8, %c0_9, %c0_10] : memref<1x8x128xf32, #tpu.memory_space<vmem>>, vector<1x8x128xf32>
      tpu.vector_store %arg9[%c0_8, %c0_9, %c0_10], %25 {strides = array<i32>} : memref<1x8x128xf32, #tpu.memory_space<vmem>>, vector<1x8x128xf32>,
      %c0_11 = arith.constant 0 : index
      %c0_12 = arith.constant 0 : index
      %27 = vector.load %arg13[%c0_11, %c0_12] : memref<1x128xf32, #tpu.memory_space<vmem>>, vector<1x128xf32>
      %28 = vector.shape_cast %27 : vector<1x128xf32> to vector<1x1x128xf32>
      %cst_13 = arith.constant dense<0.000000e+00> : vector<1xf32>
      %29 = vector.multi_reduction <add>, %28, %cst_13 [1, 2] : vector<1x1x128xf32> to vector<1xf32>
      %30 = vector.shape_cast %29 : vector<1xf32> to vector<1x1x1xf32>
      %31 = vector.extract %30[0, 0, 0] : f32 from vector<1x1x1xf32>
      %32 = vector.broadcast %31 : f32 to vector<1x8x128xf32>
      %c0_14 = arith.constant 0 : index
      %c0_15 = arith.constant 0 : index
      %c0_16 = arith.constant 0 : index
      %33 = vector.load %arg10[%c0_14, %c0_15, %c0_16] : memref<1x8x128xf32, #tpu.memory_space<vmem>>, vector<1x8x128xf32>
      tpu.vector_store %arg10[%c0_14, %c0_15, %c0_16], %32 {strides = array<i32>} : memref<1x8x128xf32, #tpu.memory_space<vmem>>, vector<1x8x128xf32>,
      %c0_17 = arith.constant 0 : index
      %c0_18 = arith.constant 0 : index
      %34 = vector.load %arg14[%c0_17, %c0_18] : memref<1x128xf32, #tpu.memory_space<vmem>>, vector<1x128xf32>
      %35 = vector.shape_cast %34 : vector<1x128xf32> to vector<1x1x128xf32>
      %cst_19 = arith.constant dense<0.000000e+00> : vector<1xf32>
      %36 = vector.multi_reduction <add>, %35, %cst_19 [1, 2] : vector<1x1x128xf32> to vector<1xf32>
      %37 = vector.shape_cast %36 : vector<1xf32> to vector<1x1x1xf32>
      %38 = vector.extract %37[0, 0, 0] : f32 from vector<1x1x1xf32>
      %39 = vector.broadcast %38 : f32 to vector<1x8x128xf32>
      %c0_20 = arith.constant 0 : index
      %c0_21 = arith.constant 0 : index
      %c0_22 = arith.constant 0 : index
      %40 = vector.load %arg11[%c0_20, %c0_21, %c0_22] : memref<1x8x128xf32, #tpu.memory_space<vmem>>, vector<1x8x128xf32>
      tpu.vector_store %arg11[%c0_20, %c0_21, %c0_22], %39 {strides = array<i32>} : memref<1x8x128xf32, #tpu.memory_space<vmem>>, vector<1x8x128xf32>,
    } else {
    }
    return
  }
  func.func @transform_0(%arg0: i32, %arg1: i32, %arg2: memref<2xi32, #tpu.memory_space<smem>>, %arg3: memref<2xi32, #tpu.memory_space<smem>>) -> (i32, i32) {
    %c1_i32 = arith.constant 1 : i32
    %0 = arith.muli %arg0, %c1_i32 : i32
    %1 = arith.addi %0, %arg1 : i32
    %2 = arith.index_cast %1 : i32 to index
    %3 = memref.load %arg2[%2] : memref<2xi32, #tpu.memory_space<smem>>
    %c0_i32 = arith.constant 0 : i32
    %c0_i32_0 = arith.constant 0 : i32
    return %3, %c0_i32 : i32, i32
  }
  func.func @transform_1(%arg0: i32, %arg1: i32, %arg2: memref<2xi32, #tpu.memory_space<smem>>, %arg3: memref<2xi32, #tpu.memory_space<smem>>) -> (i32, i32) {
    %c1_i32 = arith.constant 1 : i32
    %0 = arith.muli %arg0, %c1_i32 : i32
    %1 = arith.addi %0, %arg1 : i32
    %2 = arith.index_cast %1 : i32 to index
    %3 = memref.load %arg3[%2] : memref<2xi32, #tpu.memory_space<smem>>
    %c0_i32 = arith.constant 0 : i32
    %c0_i32_0 = arith.constant 0 : i32
    return %c0_i32, %3 : i32, i32
  }
  func.func @transform_2(%arg0: i32, %arg1: i32, %arg2: memref<2xi32, #tpu.memory_space<smem>>, %arg3: memref<2xi32, #tpu.memory_space<smem>>) -> (i32, i32) {
    %c1_i32 = arith.constant 1 : i32
    %0 = arith.muli %arg0, %c1_i32 : i32
    %1 = arith.addi %0, %arg1 : i32
    %2 = arith.index_cast %1 : i32 to index
    %3 = memref.load %arg2[%2] : memref<2xi32, #tpu.memory_space<smem>>
    %c0_i32 = arith.constant 0 : i32
    %c0_i32_0 = arith.constant 0 : i32
    return %3, %c0_i32 : i32, i32
  }
  func.func @transform_3(%arg0: i32, %arg1: i32, %arg2: memref<2xi32, #tpu.memory_space<smem>>, %arg3: memref<2xi32, #tpu.memory_space<smem>>) -> (i32, i32) {
    %c1_i32 = arith.constant 1 : i32
    %0 = arith.muli %arg0, %c1_i32 : i32
    %1 = arith.addi %0, %arg1 : i32
    %2 = arith.index_cast %1 : i32 to index
    %3 = memref.load %arg3[%2] : memref<2xi32, #tpu.memory_space<smem>>
    %c0_i32 = arith.constant 0 : i32
    %c0_i32_0 = arith.constant 0 : i32
    return %c0_i32, %3 : i32, i32
  }
  func.func @transform_4(%arg0: i32, %arg1: i32, %arg2: memref<2xi32, #tpu.memory_space<smem>>, %arg3: memref<2xi32, #tpu.memory_space<smem>>) -> (i32, i32) {
    %c1_i32 = arith.constant 1 : i32
    %0 = arith.muli %arg0, %c1_i32 : i32
    %1 = arith.addi %0, %arg1 : i32
    %2 = arith.index_cast %1 : i32 to index
    %3 = memref.load %arg3[%2] : memref<2xi32, #tpu.memory_space<smem>>
    %c0_i32 = arith.constant 0 : i32
    %c0_i32_0 = arith.constant 0 : i32
    return %c0_i32, %3 : i32, i32
  }
  func.func @transform_5(%arg0: i32, %arg1: i32, %arg2: memref<2xi32, #tpu.memory_space<smem>>, %arg3: memref<2xi32, #tpu.memory_space<smem>>) -> (i32, i32, i32) {
    %c0_i32 = arith.constant 0 : i32
    %c0_i32_0 = arith.constant 0 : i32
    %c0_i32_1 = arith.constant 0 : i32
    return %arg0, %c0_i32, %c0_i32_0 : i32, i32, i32
  }
  func.func @transform_6(%arg0: i32, %arg1: i32, %arg2: memref<2xi32, #tpu.memory_space<smem>>, %arg3: memref<2xi32, #tpu.memory_space<smem>>) -> (i32, i32, i32) {
    %c0_i32 = arith.constant 0 : i32
    %c0_i32_0 = arith.constant 0 : i32
    %c0_i32_1 = arith.constant 0 : i32
    return %arg0, %c0_i32, %c0_i32_0 : i32, i32, i32
  }
  func.func @transform_7(%arg0: i32, %arg1: i32, %arg2: memref<2xi32, #tpu.memory_space<smem>>, %arg3: memref<2xi32, #tpu.memory_space<smem>>) -> (i32, i32, i32) {
    %c0_i32 = arith.constant 0 : i32
    %c0_i32_0 = arith.constant 0 : i32
    %c0_i32_1 = arith.constant 0 : i32
    return %arg0, %c0_i32, %c0_i32_0 : i32, i32, i32
  }
}

</mosaic_0001>

<bundles_post_ra>
// kernel: tpu_custom_call.1
= control target key start
LH: loop header
LB: loop body
LE: loop exit
PB: predicated region body
PF: predicated region fallthrough
CT: control target
= control target key end

     0   :  { %s1842_s0 = inlined_call_operand.vmem [shape: s32[2], index: 0, kind: input, shape index: {}]   ;;  %s1843_s2 = inlined_call_operand.vmem [shape: f32[128,1], index: 2, kind: input, shape index: {}]   ;;  %s1844_s3 = inlined_call_operand.vmem [shape: f32[1,128], index: 3, kind: input, shape index: {}]   ;;  %s1845_s4 = inlined_call_operand.vmem [shape: f32[128,1], index: 4, kind: input, shape index: {}]   ;;  %s1846_s5 = inlined_call_operand.vmem [shape: f32[1,128], index: 5, kind: input, shape index: {}]   ;;  %s1847_s6 = inlined_call_operand.vmem [shape: f32[1,128], index: 6, kind: input, shape index: {}]   ;;  %s1848_s7 = inlined_call_operand.hbm [shape: f32[2,8,128], index: 7, kind: output, shape index: {0}]   ;;  %s1849_s8 = inlined_call_operand.hbm [shape: f32[2,8,128], index: 8, kind: output, shape index: {1}]   ;;  %s1850_s9 = inlined_call_operand.hbm [shape: f32[2,8,128], index: 9, kind: output, shape index: {2}]   ;;  %s1851_s1 = inlined_call_operand.vmem [shape: s32[2], index: 1, kind: input, shape index: {}]  }
   0x1   :  { %1860 = sst [smem:[#allocation22_spill]] %s1843_s2  ;;  %s15_s11 = sshll.u32 %s1842_s0, 4  ;;  %s16_s11 = int_to_ptr.vmem [resolvable:$true] %s15_s11 }
   0x2   :  { %s19_s14 = sshll.u32 %s1851_s1, 4  ;;  %s1272_s15 = scalar_lea.vmem %s16_s11, 16  ;;  %s20_s14 = int_to_ptr.vmem [resolvable:$true] %s19_s14 }
   0x3   :  { %p1273_p0 = scmp.ne.s32.totalorder %s16_s11, %s1272_s15  ;;  %p1277_p1 = scmp.lt.s32.totalorder %s16_s11, %s16_s11 }
   0x4   :  { %p1278_p2 = scmp.lt.s32.totalorder %s1272_s15, %s1272_s15 }
   0x6   :  { %p1279_p3 = por %p1278_p2, %p1277_p1 }
   0x8   :  { %p1280_p4 = pnand %p1279_p3, %p1273_p0 }
   0xa   :  { %1283 = shalt.err (!%p1280_p4)  }
   0xb   :  { %s1432_s16 = smov [#allocation6]   ;;  %s1284_s17 = scalar_lea.vmem %s20_s14, 16 }
   0xc   :  { %18 = dma.vmem_to_smem %s16_s11, 16, %s1432_s16, [#allocation5] }
   0xd   :  { %p1285_p5 = scmp.ne.s32.totalorder %s20_s14, %s1284_s17  ;;  %p1289_p6 = scmp.lt.s32.totalorder %s20_s14, %s20_s14 }
   0xe   :  { %p1290_p7 = scmp.lt.s32.totalorder %s1284_s17, %s1284_s17 }
  0x10   :  { %p1291_p8 = por %p1290_p7, %p1289_p6 }
  0x12   :  { %p1292_p9 = pnand %p1291_p8, %p1285_p5 }
  0x14   :  { %1295 = shalt.err (!%p1292_p9)  }
  0x15   :  { %s1433_s0 = smov [#allocation7]  }
  0x16   :  { %22 = dma.vmem_to_smem %s20_s14, 16, %s1433_s0, [#allocation5] }
  0x17   :  { %1398 = dma.done.wait [#allocation5], 32 }
  0x18   :  { %1399 = vsyncadd [#allocation5], 4294967264 }
  0x19   :  { %24 = sfence }
  0x1a   :  { %25 = vsyncpa [#allocation9], 0 }
  0x1b   :  { %27 = vsyncpa [#allocation9 + $0x1], 0 }
  0x1c   :  { %28 = vsyncpa [#allocation11], 0 }
  0x1d   :  { %30 = vsyncpa [#allocation11 + $0x1], 0  ;;  %s1496_s1 = smov 0   ;;  %s1498_s18 = smov 0  }
  0x1e   :  { %s1500_s19 = smov 0   ;;  %s1502_s20 = smov 0  }
  0x1f   :  { %s1504_s21 = smov 0   ;;  %s1506_s22 = smov 0  }
  0x20 LB: > { %1861 = sst [smem:[#allocation16_spill]] %s1410_s1  ;;  %s1854_s23 = sadd.s32 4294967295, %s1430_s22   ;;  %s1430_s22 = sphi %s1506_s22, %s36_s22   ;;  %s1426_s21 = sphi %s1504_s21, %s1879_s21   ;;  %s1422_s20 = sphi %s1502_s20, %s1878_s20   ;;  %s1418_s19 = sphi %s1500_s19, %s1877_s19   ;;  %s1414_s18 = sphi %s1498_s18, %s1881_s18   ;;  %s1410_s1 = sphi %s1496_s1, %s1880_s1  }
  0x21   : > { %1862 = sst [smem:[#allocation17_spill]] %s1418_s19  ;;  %s1852_s24 = sadd.s32 4294967294, %s1430_s22  }
  0x22   : > { %1863 = sst [smem:[#allocation18_spill]] %s1426_s21  ;;  %s48_s25 = sadd.s32 1, %s1426_s21 }
  0x23   : > { %s205_s26 = sadd.s32 1, %s1418_s19  ;;  %p50_p10 = scmp.ge.s32.totalorder %s48_s25, 2 }
  0x24   : > { %p215_p11 = scmp.ne.s32.totalorder %s1418_s19, %s1414_s18  ;;  %p216_p12 = scmp.eq.s32.totalorder %s1854_s23, 1 }
  0x25   : > { %p221_p13 = scmp.ne.s32.totalorder %s1414_s18, %s1410_s1  ;;  %s1883_s25 = smov (%p50_p10, %s48_s25), 0 }
  0x26   : > { %1864 = sst [smem:[#allocation19_spill]] %s1883_s25  ;;  %p1538_p0 = por %p216_p12, %p215_p11 }
  0x27   : > { %p222_p1 = scmp.eq.s32.totalorder %s1852_s24, 1  ;;  %s202_s28 = ssub.s32 %s1426_s21, %s1883_s25 }
  0x28   : > { %p1154_p2 = scmp.ge.s32.totalorder %s1430_s22, 1  ;;  %p203_p3 = scmp.eq.s32.totalorder %s202_s28, 0 }
  0x29   : > { %p1547_p4 = por %p222_p1, %p221_p13  ;;  %p348_p5 = scmp.lt.s32.totalorder %s1430_s22, 3 }
  0x2a   : > { %s1553_s30 = scalar_select %p203_p3, %s1418_s19, %s205_s26  }
  0x2b   : > { %s1866_s29 = scalar_select %p1547_p4, 1, 0 }
  0x2c   : > { %1868 = sst [smem:[#allocation21_spill]] %s1553_s30  ;;  %p349_p6 = pnand %p1154_p2, %p348_p5 }
  0x2d   : > { %1867 = sst [smem:[#allocation20_spill]] %s1866_s29  ;;  %s1853_s10 = sand.u32 (!%p349_p6), 1, %s1414_s18  }
  0x2e   : > { %352 = sbr.rel (%p349_p6) target bundleno = 594 (0x252), region = 40  ;;  %s415_s11 = sld [smem:[#allocation6 + %s1422_s20]] (!%p349_p6) }
  0x2f   : > { %s1559_s12 = sshll.u32 (!%p349_p6), %s1853_s10, 3  ;;  %s425_s13 = sld [smem:[#allocation7 + %s1422_s20]] (!%p349_p6) }
  0x30   : > { %s432_s14 = sld [smem:[#allocation6 + %s1422_s20]] (!%p349_p6)  ;;  %p458_p7 = scmp.lt.s32.totalorder (!%p349_p6), %s1422_s20, 1 }
  0x31   : > { %s442_s15 = sld [smem:[#allocation7 + %s1422_s20]] (!%p349_p6)  ;;  %s406_s1 = scalar_lea.vmem (!%p349_p6), [#allocation10], %s1559_s12 }
  0x32   : > { %s449_s16 = sld [smem:[#allocation7 + %s1422_s20]] (!%p349_p6)  ;;  %p1162_p1 = scmp.ge.s32.totalorder (!%p349_p6), %s1422_s20, 1 }
  0x33   : > { %v1434_v0 = vmov 0.0   ;;  %s1567_s0 = sld [smem:[#allocation6 + %s1422_s20]] }
  0x34   : > { %464 = vst [vmem:[#allocation2] sm:$0x1] %v1434_v0  ;;  %465 = vst [vmem:[#allocation3] sm:$0x1] %v1434_v0  ;;  %s1158_s17 = sshll.u32 %s415_s11, 4  ;;  %s1570_s26 = sld [smem:[#allocation7 + %s1422_s20]] }
  0x35   : > { %466 = vst [vmem:[#allocation4] sm:$0x1] %v1434_v0  ;;  %p417_p8 = scmp.lt.s32.totalorder %s1158_s17, 15  ;;  %p426_p9 = scmp.lt.s32.totalorder %s425_s13, 0 }
  0x36   : > { %s1160_s24 = sshll.u32 %s432_s14, 4  ;;  %s1869_s2 = sld [smem:[#allocation22_spill]] }
  0x37   : > { %s1885_s17 = smov (!%p417_p8, %s1158_s17), 15  ;;  %s1887_s13 = smov (!%p426_p9, %s425_s13), 0 }
  0x38   : > { %s1159_s28 = sshll.u32 %s1885_s17, 3  ;;  %p434_p10 = scmp.lt.s32.totalorder %s1160_s24, 15 }
  0x39   : > { %p443_p11 = scmp.lt.s32.totalorder %s442_s15, 0  ;;  %p450_p12 = scmp.lt.s32.totalorder %s449_s16, 0 }
  0x3a   : > { %p459_p13 = scmp.eq.s32.totalorder %s1567_s0, %s1570_s26  ;;  %s1889_s24 = smov (!%p434_p10, %s1160_s24), 15 }
  0x3b   : > { %s1891_s15 = smov (!%p443_p11, %s442_s15), 0  ;;  %s1161_s19 = sshll.u32 %s1889_s24, 3 }
  0x3c   : > { %s1577_s11 = scalar_lea.vmem %s1869_s2, %s1159_s28  ;;  %s1588_s14 = scalar_lea.vmem %s1845_s4, %s1161_s19 }
  0x3d   : > { %s1593_s28 = scalar_lea.vmem %s1846_s5, %s1891_s15  ;;  %s1893_s16 = smov (!%p450_p12, %s449_s16), 0 }
  0x3e   : > { %s452_s30 = scalar_lea.vmem %s1847_s6, %s1893_s16  ;;  %s399_s2 = scalar_lea.vmem [#allocation8], %s1559_s12 }
  0x3f   : > { %s413_s24 = scalar_lea.vmem [#allocation12], %s1559_s12  ;;  %469 = sbr.rel (%p1162_p1) target bundleno = 279 (0x117), region = 48 }
  0x40   : > { %s1870_s15 = scalar_lea.vmem (!%p1162_p1), %s1844_s3, %s1887_s13 }
  0x44   : > { %v472_v1 = vld [vmem:[%s1588_s14 + $0x10] sm:$0xff]  ;;  %v470_v2 = vld [vmem:[%s1588_s14] sm:$0xff]  ;;  %v1435_v3 = vmov 0   ;;  %v473_v4 = vld [vmem:[%s1588_s14 + $0x18] sm:$0xff]  ;;  %v1436_v0 = vmov 0.0  }
  0x45   : > { %1267 = vset.pattern.permute.xlu1 %v1435_v3  ;;  %1266 = vset.pattern.permute.xlu0 %v1435_v3  ;;  %v471_v5 = vld [vmem:[%s1588_s14 + $0x8] sm:$0xff]  ;;  %v621_v7 = vld [vmem:[%s1577_s11] sm:$0xff]  ;;  %v624_v8 = vld [vmem:[%s1577_s11 + $0x18] sm:$0xff]  ;;  %s740_s13 = scalar_select %p459_p13, 1.0, 2.0 }
  0x46   : > { %499 = vperm.xlu1 %1267, %v472_v1   ;;  %489 = vperm.xlu0 %1266, %v470_v2   ;;  %v622_v6 = vld [vmem:[%s1577_s11 + $0x8] sm:$0xff]  ;;  %v623_v9 = vld [vmem:[%s1577_s11 + $0x10] sm:$0xff]  ;;  %v625_v10 = vld [vmem:[%s1577_s11 + $0x20] sm:$0xff] }
  0x47   : > { %v474_v11 = vld [vmem:[%s1588_s14 + $0x20] sm:$0xff]  ;;  %v626_v12 = vld [vmem:[%s1577_s11 + $0x28] sm:$0xff]  ;;  %v627_v14 = vld [vmem:[%s1577_s11 + $0x30] sm:$0xff] }
  0x48   : > { %v475_v13 = vld [vmem:[%s1588_s14 + $0x28] sm:$0xff]  ;;  %v476_v15 = vld [vmem:[%s1588_s14 + $0x30] sm:$0xff]  ;;  %v628_v16 = vld [vmem:[%s1577_s11 + $0x38] sm:$0xff] }
  0x49   : > { %v477_v17 = vld [vmem:[%s1588_s14 + $0x38] sm:$0xff]  ;;  %v629_v18 = vld [vmem:[%s1577_s11 + $0x40] sm:$0xff]  ;;  %v630_v20 = vld [vmem:[%s1577_s11 + $0x48] sm:$0xff] }
  0x4a   : > { %504 = vperm.xlu1 %1267, %v473_v4   ;;  %494 = vperm.xlu0 %1266, %v471_v5   ;;  %v478_v19 = vld [vmem:[%s1588_s14 + $0x40] sm:$0xff]  ;;  %v479_v21 = vld [vmem:[%s1588_s14 + $0x48] sm:$0xff]  ;;  %v631_v22 = vld [vmem:[%s1577_s11 + $0x50] sm:$0xff] }
  0x4b   : > { %v480_v23 = vld [vmem:[%s1588_s14 + $0x50] sm:$0xff]  ;;  %v632_v24 = vld [vmem:[%s1577_s11 + $0x58] sm:$0xff]  ;;  %v633_v26 = vld [vmem:[%s1577_s11 + $0x60] sm:$0xff] }
  0x4c   : > { %v481_v25 = vld [vmem:[%s1588_s14 + $0x58] sm:$0xff]  ;;  %v482_v27 = vld [vmem:[%s1588_s14 + $0x60] sm:$0xff]  ;;  %v634_v28 = vld [vmem:[%s1577_s11 + $0x68] sm:$0xff] }
  0x4d   : > { %v483_v29 = vld [vmem:[%s1588_s14 + $0x68] sm:$0xff]  ;;  %v635_v30 = vld [vmem:[%s1577_s11 + $0x70] sm:$0xff]  ;;  %v636_v32 = vld [vmem:[%s1577_s11 + $0x78] sm:$0xff] }
  0x4e   : > { %645 = vperm.xlu1 %1267, %v622_v6   ;;  %640 = vperm.xlu0 %1266, %v621_v7   ;;  %v484_v31 = vld [vmem:[%s1588_s14 + $0x70] sm:$0xff]  ;;  %v485_v33 = vld [vmem:[%s1588_s14 + $0x78] sm:$0xff]  ;;  %v1638_v42 = vld [vmem:[%s1593_s28] ss:$0 sm:$0xff] }
  0x4f   : > { %v1646_v44 = vld [vmem:[%s1870_s15] ss:$0 sm:$0xff] }
  0x52   : > { %655 = vperm.xlu1 %1267, %v624_v8   ;;  %650 = vperm.xlu0 %1266, %v623_v9  }
  0x56   : > { %660 = vperm.xlu1 %1267, %v625_v10   ;;  %509 = vperm.xlu0 %1266, %v474_v11  }
  0x5a   : > { %665 = vperm.xlu1 %1267, %v626_v12   ;;  %514 = vperm.xlu0 %1266, %v475_v13  }
  0x5e   : > { %670 = vperm.xlu1 %1267, %v627_v14   ;;  %519 = vperm.xlu0 %1266, %v476_v15  }
  0x62   : > { %675 = vperm.xlu1 %1267, %v628_v16   ;;  %524 = vperm.xlu0 %1266, %v477_v17  }
  0x66   : > { %680 = vperm.xlu1 %1267, %v629_v18   ;;  %529 = vperm.xlu0 %1266, %v478_v19  }
  0x6a   : > { %685 = vperm.xlu1 %1267, %v630_v20   ;;  %534 = vperm.xlu0 %1266, %v479_v21  }
  0x6e   : > { %690 = vperm.xlu1 %1267, %v631_v22   ;;  %539 = vperm.xlu0 %1266, %v480_v23  }
  0x72   : > { %695 = vperm.xlu1 %1267, %v632_v24   ;;  %544 = vperm.xlu0 %1266, %v481_v25  }
  0x76   : > { %700 = vperm.xlu1 %1267, %v633_v26   ;;  %549 = vperm.xlu0 %1266, %v482_v27  }
  0x7a   : > { %705 = vperm.xlu1 %1267, %v634_v28   ;;  %554 = vperm.xlu0 %1266, %v483_v29  }
  0x7e   : > { %710 = vperm.xlu1 %1267, %v635_v30   ;;  %559 = vperm.xlu0 %1266, %v484_v31  }
  0x82   : > { %715 = vperm.xlu1 %1267, %v636_v32   ;;  %564 = vperm.xlu0 %1266, %v485_v33  }
  0xc1   : > { %v500_v34 = vpop.permute.xlu1 %499  ;;  %v490_v35 = vpop.permute.xlu0 %489 }
  0xc2   : > { %v573_v45 = vsub.f32 %v490_v35, %v1638_v42  ;;  %v575_v50 = vsub.f32 %v500_v34, %v1638_v42 }
  0xc4   : > { %v589_v53 = vand.u32 2147483647, %v573_v45  ;;  %v591_v58 = vand.u32 2147483647, %v575_v50 }
  0xc5   : > { %v505_v36 = vpop.permute.xlu1 %504  ;;  %v495_v37 = vpop.permute.xlu0 %494 }
  0xc6   : > { %v574_v43 = vsub.f32 %v495_v37, %v1638_v42  ;;  %v576_v59 = vsub.f32 %v505_v36, %v1638_v42  ;;  %vm605_vm1 = vcmp.ge.f32.partialorder %v589_v53, 0.2  ;;  %vm607_vm2 = vcmp.ge.f32.partialorder %v591_v58, 0.2 }
  0xc7   : > { %v1165_v5 = vsel %vm605_vm1, 1.0, %v1436_v0  ;;  %v1167_v17 = vsel %vm607_vm2, 1.0, %v1436_v0 }
  0xc8   : > { %v590_v51 = vand.u32 2147483647, %v574_v43  ;;  %v592_v6 = vand.u32 2147483647, %v576_v59 }
  0xc9   : > { %v646_v38 = vpop.permute.xlu1 %645  ;;  %v641_v39 = vpop.permute.xlu0 %640 }
  0xca   : > { %v725_v48 = vsub.f32 %v646_v38, %v1646_v44  ;;  %v724_v49 = vsub.f32 %v641_v39, %v1646_v44  ;;  %vm606_vm0 = vcmp.ge.f32.partialorder %v590_v51, 0.2  ;;  %vm608_vm3 = vcmp.ge.f32.partialorder %v592_v6, 0.2 }
  0xcb   : > { %v1166_v1 = vsel %vm606_vm0, 1.0, %v1436_v0  ;;  %v1168_v26 = vsel %vm608_vm3, 1.0, %v1436_v0 }
  0xcc   : > { %v743_v56 = vmul.f32 %v725_v48, %v725_v48  ;;  %v742_v57 = vmul.f32 %v724_v49, %v724_v49  ;;  %v832_v9 = vadd.f32 %v1166_v1, %v1165_v5 }
  0xcd   : > { %v656_v40 = vpop.permute.xlu1 %655  ;;  %v651_v41 = vpop.permute.xlu0 %650 }
  0xce   : > { %v726_v52 = vsub.f32 %v651_v41, %v1646_v44  ;;  %v759_v2 = vsel %vm606_vm0, %v743_v56, 0.0  ;;  %v758_v3 = vsel %vm605_vm1, %v742_v57, 0.0  ;;  %v727_v4 = vsub.f32 %v656_v40, %v1646_v44 }
  0xcf   : > { %v774_v10 = vadd.f32 %v759_v2, %v758_v3  ;;  %v833_v20 = vadd.f32 %v1167_v17, %v832_v9 }
  0xd0   : > { %v744_v60 = vmul.f32 %v726_v52, %v726_v52  ;;  %v745_v15 = vmul.f32 %v727_v4, %v727_v4 }
  0xd1   : > { %v661_v46 = vpop.permute.xlu1 %660  ;;  %v510_v47 = vpop.permute.xlu0 %509  ;;  %v834_v32 = vadd.f32 %v1168_v26, %v833_v20 }
  0xd2   : > { %v577_v61 = vsub.f32 %v510_v47, %v1638_v42  ;;  %v760_v7 = vsel %vm607_vm2, %v744_v60, 0.0  ;;  %v728_v8 = vsub.f32 %v661_v46, %v1646_v44  ;;  %v761_v25 = vsel %vm608_vm3, %v745_v15, 0.0 }
  0xd3   : > { %v775_v16 = vadd.f32 %v774_v10, %v760_v7 }
  0xd4   : > { %v593_v11 = vand.u32 2147483647, %v577_v61  ;;  %v746_v18 = vmul.f32 %v728_v8, %v728_v8 }
  0xd5   : > { %v666_v54 = vpop.permute.xlu1 %665  ;;  %v515_v55 = vpop.permute.xlu0 %514  ;;  %v776_v27 = vadd.f32 %v775_v16, %v761_v25 }
  0xd6   : > { %v578_v12 = vsub.f32 %v515_v55, %v1638_v42  ;;  %v729_v19 = vsub.f32 %v666_v54, %v1646_v44  ;;  %vm609_vm4 = vcmp.ge.f32.partialorder %v593_v11, 0.2 }
  0xd7   : > { %v762_v28 = vsel %vm609_vm4, %v746_v18, 0.0  ;;  %v1169_v29 = vsel %vm609_vm4, 1.0, %v1436_v0 }
  0xd8   : > { %v594_v21 = vand.u32 2147483647, %v578_v12  ;;  %v747_v30 = vmul.f32 %v729_v19, %v729_v19  ;;  %v777_v38 = vadd.f32 %v776_v27, %v762_v28  ;;  %v835_v39 = vadd.f32 %v1169_v29, %v834_v32 }
  0xd9   : > { %v671_v62 = vpop.permute.xlu1 %670  ;;  %v520_v63 = vpop.permute.xlu0 %519 }
  0xda   : > { %v579_v22 = vsub.f32 %v520_v63, %v1638_v42  ;;  %v730_v31 = vsub.f32 %v671_v62, %v1646_v44  ;;  %vm610_vm5 = vcmp.ge.f32.partialorder %v594_v21, 0.2 }
  0xdb   : > { %v763_v40 = vsel %vm610_vm5, %v747_v30, 0.0  ;;  %v1170_v41 = vsel %vm610_vm5, 1.0, %v1436_v0 }
  0xdc   : > { %v595_v33 = vand.u32 2147483647, %v579_v22  ;;  %v748_v43 = vmul.f32 %v730_v31, %v730_v31  ;;  %v778_v53 = vadd.f32 %v777_v38, %v763_v40  ;;  %v836_v54 = vadd.f32 %v1170_v41, %v835_v39 }
  0xdd   : > { %v676_v13 = vpop.permute.xlu1 %675  ;;  %v525_v14 = vpop.permute.xlu0 %524 }
  0xde   : > { %v580_v34 = vsub.f32 %v525_v14, %v1638_v42  ;;  %v731_v45 = vsub.f32 %v676_v13, %v1646_v44  ;;  %vm611_vm6 = vcmp.ge.f32.partialorder %v595_v33, 0.2 }
  0xdf   : > { %v764_v55 = vsel %vm611_vm6, %v748_v43, 0.0  ;;  %v1171_v56 = vsel %vm611_vm6, 1.0, %v1436_v0 }
  0xe0   : > { %v596_v46 = vand.u32 2147483647, %v580_v34  ;;  %v749_v57 = vmul.f32 %v731_v45, %v731_v45  ;;  %v779_v3 = vadd.f32 %v778_v53, %v764_v55  ;;  %v837_v4 = vadd.f32 %v1171_v56, %v836_v54 }
  0xe1   : > { %v681_v23 = vpop.permute.xlu1 %680  ;;  %v530_v24 = vpop.permute.xlu0 %529 }
  0xe2   : > { %v581_v37 = vsub.f32 %v530_v24, %v1638_v42  ;;  %v732_v47 = vsub.f32 %v681_v23, %v1646_v44  ;;  %vm612_vm7 = vcmp.ge.f32.partialorder %v596_v46, 0.2 }
  0xe3   : > { %v765_v5 = vsel %vm612_vm7, %v749_v57, 0.0  ;;  %v1172_v6 = vsel %vm612_vm7, 1.0, %v1436_v0 }
  0xe4   : > { %v597_v51 = vand.u32 2147483647, %v581_v37  ;;  %v750_v59 = vmul.f32 %v732_v47, %v732_v47  ;;  %v780_v17 = vadd.f32 %v779_v3, %v765_v5  ;;  %v838_v18 = vadd.f32 %v1172_v6, %v837_v4 }
  0xe5   : > { %v686_v35 = vpop.permute.xlu1 %685  ;;  %v535_v36 = vpop.permute.xlu0 %534 }
  0xe6   : > { %v582_v48 = vsub.f32 %v535_v36, %v1638_v42  ;;  %v733_v58 = vsub.f32 %v686_v35, %v1646_v44  ;;  %vm613_vm8 = vcmp.ge.f32.partialorder %v597_v51, 0.2 }
  0xe7   : > { %v766_v9 = vsel %vm613_vm8, %v750_v59, 0.0  ;;  %v1173_v14 = vsel %vm613_vm8, 1.0, %v1436_v0 }
  0xe8   : > { %v598_v60 = vand.u32 2147483647, %v582_v48  ;;  %v751_v7 = vmul.f32 %v733_v58, %v733_v58  ;;  %v781_v23 = vadd.f32 %v780_v17, %v766_v9  ;;  %v839_v24 = vadd.f32 %v1173_v14, %v838_v18 }
  0xe9   : > { %v691_v49 = vpop.permute.xlu1 %690  ;;  %v540_v50 = vpop.permute.xlu0 %539  ;;  %v795_v17 = vstv %s740_s13 }
  0xea   : > { %v583_v52 = vsub.f32 %v540_v50, %v1638_v42  ;;  %v734_v61 = vsub.f32 %v691_v49, %v1646_v44  ;;  %vm614_vm9 = vcmp.ge.f32.partialorder %v598_v60, 0.2 }
  0xeb   : > { %v767_v19 = vsel %vm614_vm9, %v751_v7, 0.0  ;;  %v1174_v20 = vsel %vm614_vm9, 1.0, %v1436_v0 }
  0xec   : > { %v599_v1 = vand.u32 2147483647, %v583_v52  ;;  %v752_v10 = vmul.f32 %v734_v61, %v734_v61  ;;  %v782_v32 = vadd.f32 %v781_v23, %v767_v19  ;;  %v840_v33 = vadd.f32 %v1174_v20, %v839_v24  ;;  %v741_v20 = vld [vmem:[#allocation2] sm:$0x1] }
  0xed   : > { %v696_v62 = vpop.permute.xlu1 %695  ;;  %v545_v63 = vpop.permute.xlu0 %544 }
  0xee   : > { %v584_v2 = vsub.f32 %v545_v63, %v1638_v42  ;;  %v735_v8 = vsub.f32 %v696_v62, %v1646_v44  ;;  %vm615_vm10 = vcmp.ge.f32.partialorder %v599_v1, 0.2 }
  0xef   : > { %v768_v25 = vsel %vm615_vm10, %v752_v10, 0.0  ;;  %v1175_v28 = vsel %vm615_vm10, 1.0, %v1436_v0 }
  0xf0   : > { %v600_v11 = vand.u32 2147483647, %v584_v2  ;;  %v753_v21 = vmul.f32 %v735_v8, %v735_v8  ;;  %v783_v36 = vadd.f32 %v782_v32, %v768_v25  ;;  %v841_v37 = vadd.f32 %v1175_v28, %v840_v33 }
  0xf1   : > { %v701_v12 = vpop.permute.xlu1 %700  ;;  %v550_v13 = vpop.permute.xlu0 %549 }
  0xf2   : > { %v736_v15 = vsub.f32 %v701_v12, %v1646_v44  ;;  %v585_v16 = vsub.f32 %v550_v13, %v1638_v42  ;;  %vm616_vm11 = vcmp.ge.f32.partialorder %v600_v11, 0.2 }
  0xf3   : > { %v769_v34 = vsel %vm616_vm11, %v753_v21, 0.0  ;;  %v1176_v38 = vsel %vm616_vm11, 1.0, %v1436_v0  ;;  %v799_v21 = vld [vmem:[#allocation3] sm:$0x1] }
  0xf4   : > { %v601_v22 = vand.u32 2147483647, %v585_v16  ;;  %v754_v29 = vmul.f32 %v736_v15, %v736_v15  ;;  %v784_v47 = vadd.f32 %v783_v36, %v769_v34  ;;  %v842_v49 = vadd.f32 %v1176_v38, %v841_v37 }
  0xf5   : > { %v706_v26 = vpop.permute.xlu1 %705  ;;  %v555_v27 = vpop.permute.xlu0 %554 }
  0xf6   : > { %v737_v30 = vsub.f32 %v706_v26, %v1646_v44  ;;  %v586_v31 = vsub.f32 %v555_v27, %v1638_v42  ;;  %vm617_vm12 = vcmp.ge.f32.partialorder %v601_v22, 0.2 }
  0xf7   : > { %v770_v43 = vsel %vm617_vm12, %v754_v29, 0.0  ;;  %v1177_v48 = vsel %vm617_vm12, 1.0, %v1436_v0 }
  0xf8   : > { %v602_v35 = vand.u32 2147483647, %v586_v31  ;;  %v755_v39 = vmul.f32 %v737_v30, %v737_v30  ;;  %v785_v52 = vadd.f32 %v784_v47, %v770_v43  ;;  %v843_v57 = vadd.f32 %v1177_v48, %v842_v49 }
  0xf9   : > { %v711_v40 = vpop.permute.xlu1 %710  ;;  %v560_v41 = vpop.permute.xlu0 %559 }
  0xfa   : > { %vm618_vm13 = vcmp.ge.f32.partialorder %v602_v35, 0.2  ;;  %v738_v45 = vsub.f32 %v711_v40, %v1646_v44  ;;  %v587_v46 = vsub.f32 %v560_v41, %v1638_v42 }
  0xfb   : > { %v771_v53 = vsel %vm618_vm13, %v755_v39, 0.0  ;;  %v1178_v54 = vsel %vm618_vm13, 1.0, %v1436_v0 }
  0xfc   : > { %v756_v50 = vmul.f32 %v738_v45, %v738_v45  ;;  %v603_v51 = vand.u32 2147483647, %v587_v46  ;;  %v786_v62 = vadd.f32 %v785_v52, %v771_v53  ;;  %v844_v63 = vadd.f32 %v1178_v54, %v843_v57 }
  0xfd   : > { %v716_v55 = vpop.permute.xlu1 %715  ;;  %v565_v56 = vpop.permute.xlu0 %564 }
  0xfe   : > { %vm619_vm14 = vcmp.ge.f32.partialorder %v603_v51, 0.2  ;;  %v739_v58 = vsub.f32 %v716_v55, %v1646_v44  ;;  %v588_v59 = vsub.f32 %v565_v56, %v1638_v42 }
  0xff   : > { %v772_v60 = vsel %vm619_vm14, %v756_v50, 0.0  ;;  %v1179_v61 = vsel %vm619_vm14, 1.0, %v1436_v0 }
 0x100   : > { %v757_v1 = vmul.f32 %v739_v58, %v739_v58  ;;  %v604_v2 = vand.u32 2147483647, %v588_v59  ;;  %v787_v3 = vadd.f32 %v786_v62, %v772_v60  ;;  %v845_v4 = vadd.f32 %v1179_v61, %v844_v63 }
 0x102   : > { %vm620_vm15 = vcmp.ge.f32.partialorder %v604_v2, 0.2 }
 0x103   : > { %v773_v5 = vsel %vm620_vm15, %v757_v1, 0.0  ;;  %v1180_v6 = vsel %vm620_vm15, 1.0, %v1436_v0 }
 0x104   : > { %v788_v7 = vadd.f32 %v787_v3, %v773_v5  ;;  %v846_v8 = vadd.f32 %v1180_v6, %v845_v4 }
 0x106   : > { %v789_v44 = vrot.slane %v788_v7, 4  ;;  %v847_v9 = vrot.slane %v846_v8, 4 }
 0x108   : > { %v790_v42 = vadd.f32 %v789_v44, %v788_v7  ;;  %v848_v10 = vadd.f32 %v847_v9, %v846_v8 }
 0x10a   : > { %v791_v11 = vrot.slane %v790_v42, 2  ;;  %v849_v12 = vrot.slane %v848_v10, 2 }
 0x10c   : > { %v792_v13 = vadd.f32 %v791_v11, %v790_v42  ;;  %v850_v14 = vadd.f32 %v849_v12, %v848_v10 }
 0x10e   : > { %v793_v15 = vrot.slane %v792_v13, 1  ;;  %v851_v16 = vrot.slane %v850_v14, 1 }
 0x110   : > { %v794_v18 = vadd.f32 %v793_v15, %v792_v13  ;;  %v852_v19 = vadd.f32 %v851_v16, %v850_v14 }
 0x112   : > { %v796_v0 = vmul.f32 %v795_v17, %v794_v18  ;;  %v853_v22 = vmul.f32 %v852_v19, %v795_v17 }
 0x114   : > { %v797_v23 = vadd.f32 %v796_v0, %v741_v20  ;;  %v854_v24 = vadd.f32 %v853_v22, %v799_v21 }
 0x116   : > { %798 = vst [vmem:[#allocation2] sm:$0x1] %v797_v23  ;;  %855 = vst [vmem:[#allocation3] sm:$0x1] %v854_v24 }
 0x117 PF: > { %p856_p2 = scmp.eq.s32.totalorder %s1567_s0, 0 }
 0x119   : > { %p857_p3 = pnand %p856_p2, %p458_p7 }
 0x11a   : > { %s1181_s0 = sshll.u32 (!%p857_p3), %s1570_s26, 7 }
 0x11b   : > { %860 = sbr.rel (%p857_p3) target bundleno = 334 (0x14e), region = 52 }
 0x120   : > { %v861_v25 = vld [vmem:[%s452_s30] sm:$0x1]  ;;  %v880_v32 = vlaneseq  ;;  %v883_v39 = vstv %s1181_s0  ;;  %v887_v49 = vld [vmem:[#allocation4] sm:$0x1] }
 0x121   : > { %v866_v26 = vand.u32 2147483647, %v861_v25  ;;  %v862_v33 = vld [vmem:[%s1593_s28] sm:$0x1]  ;;  %v863_v36 = vmax.f32 %v861_v25, 0.0 }
 0x122   : > { %v881_v35 = vand.u32 127, %v880_v32  ;;  %v864_v37 = vmul.f32 %v862_v33, %v861_v25 }
 0x123   : > { %v867_v27 = vsub.f32 0.0, %v866_v26 }
 0x124   : > { %v884_v41 = vadd.s32 %v883_v39, %v881_v35  ;;  %v865_v45 = vsub.f32 %v863_v36, %v864_v37 }
 0x125   : > { %v868_v28 = vmul.f32 1.442695, %v867_v27 }
 0x126   : > { %vm885_vm1 = vcmp.lt.s32.totalorder %v884_v41, 8 }
 0x127   : > { %1268 = vpow2.f32 %v868_v28 }
 0x134   : > { %v1269_v29 = vpop.eup %1268 }
 0x135   : > { %v870_v30 = vadd.f32 1.0, %v1269_v29  ;;  %v873_v31 = vmul.f32 -0.5, %v1269_v29  ;;  %v876_v38 = vand.u32 2147483647, %v1269_v29 }
 0x137   : > { %1270 = vlog2.f32 %v870_v30  ;;  %v874_v34 = vadd.f32 1.0, %v873_v31  ;;  %vm877_vm0 = vcmp.lt.f32.partialorder %v876_v38, 0.0004427343 }
 0x139   : > { %v875_v40 = vmul.f32 %v1269_v29, %v874_v34 }
 0x144   : > { %v1271_v43 = vpop.eup %1270 }
 0x145   : > { %v872_v46 = vmul.f32 0.6931472, %v1271_v43 }
 0x147   : > { %v878_v47 = vsel %vm877_vm0, %v875_v40, %v872_v46 }
 0x148   : > { %v879_v48 = vadd.f32 %v878_v47, %v865_v45 }
 0x14a   : > { %v886_v50 = vsel %vm885_vm1, %v879_v48, 0.0 }
 0x14b   : > { %v888_v51 = vadd.f32 %v887_v49, %v886_v50 }
 0x14d   : > { %889 = vst [vmem:[#allocation4] sm:$0x1] %v888_v51 }
 0x14e PF: > { %vm894_vm2 = vcmask 1040384   ;;  %v893_v53 = vld [vmem:[#allocation2] sm:$0x1]  ;;  %v907_v56 = vld [vmem:[#allocation3] sm:$0x1]  ;;  %s1709_s30 = sshll.u32 %s1422_s20, 7 }
 0x14f   : > { %v895_v55 = vsel %vm894_vm2, %v893_v53, 0.0  ;;  %v908_v57 = vsel %vm894_vm2, %v907_v56, 0.0  ;;  %s957_s16 = sshll.u32 %s399_s2, 4  ;;  %s1871_s26 = sadd.s32 4294967295, %s1430_s22   ;;  %s1725_s16 = int_to_ptr.vmem [resolvable:$true] %s957_s16 }
 0x150   : > { %896 = vadd.xlane.f32.xlu0 %v895_v55  ;;  %s1715_s14 = sand.u32 1, %s1871_s26   ;;  %s970_s23 = sshll.u32 %s406_s1, 4  ;;  %s1735_s23 = int_to_ptr.vmem [resolvable:$true] %s970_s23 }
 0x151   : > { %s1723_s21 = scalar_lea.hbm %s1848_s7, %s1709_s30  ;;  %s1731_s29 = scalar_lea.hbm %s1849_s8, %s1709_s30 }
 0x152   : > { %s983_s15 = sshll.u32 %s413_s24, 4  ;;  %s1872_s13 = sand.u32 1, %s1414_s18   ;;  %s1767_s15 = int_to_ptr.vmem [resolvable:$true] %s983_s15 }
 0x153   : > { %s934_s11 = scalar_lea.sflag [#allocation9], %s1872_s13  ;;  %s1296_s17 = scalar_lea.vmem %s1725_s16, 128 }
 0x154   : > { %v920_v52 = vld [vmem:[#allocation4] sm:$0x1]  ;;  %909 = vadd.xlane.f32.xlu0 %v908_v57  ;;  %p1297_p5 = scmp.ne.s32.totalorder %s1725_s16, %s1296_s17  ;;  %s1437_s0 = smov [#allocation8]  }
 0x155   : > { %v921_v54 = vsel %vm894_vm2, %v920_v52, 0.0  ;;  %s1300_s26 = sshll.u32 %s1437_s0, 4  ;;  %s1301_s26 = int_to_ptr.vmem [resolvable:$false] %s1300_s26 }
 0x156   : > { %922 = vadd.xlane.f32.xlu1 %v921_v54  ;;  %p1298_p6 = pnand %p1297_p5, %p1538_p0  ;;  %s1302_s10 = scalar_lea.vmem %s1301_s26, 256 }
 0x157   : > { %p1303_p8 = scmp.lt.s32.totalorder %s1725_s16, %s1301_s26  ;;  %p1304_p9 = scmp.lt.s32.totalorder %s1302_s10, %s1296_s17 }
 0x158   : > { %p1299_p7 = pneg %p1298_p6 }
 0x159   : > { %p1305_p10 = por %p1304_p9, %p1303_p8 }
 0x15b   : > { %p1306_p11 = pnand %p1305_p10, %p1299_p7 }
 0x1d9   : > { %v897_v59 = vpop.xlane.xlu0 %896 }
 0x1da   : > { %v898_v61 = vrot.slane %v897_v59, 4 }
 0x1dc   : > { %v899_v63 = vadd.f32 %v898_v61, %v897_v59 }
 0x1dd   : > { %v910_v1 = vpop.xlane.xlu0 %909 }
 0x1de   : > { %v900_v3 = vrot.slane %v899_v63, 2  ;;  %v911_v4 = vrot.slane %v910_v1, 4 }
 0x1df   : > { %v923_v58 = vpop.xlane.xlu1 %922 }
 0x1e0   : > { %v924_v60 = vrot.slane %v923_v58, 4  ;;  %v912_v5 = vadd.f32 %v911_v4, %v910_v1  ;;  %v901_v6 = vadd.f32 %v900_v3, %v899_v63 }
 0x1e2   : > { %v925_v62 = vadd.f32 %v924_v60, %v923_v58  ;;  %v913_v8 = vrot.slane %v912_v5, 2  ;;  %v902_v44 = vrot.slane %v901_v6, 1 }
 0x1e4   : > { %v926_v2 = vrot.slane %v925_v62, 2  ;;  %v914_v9 = vadd.f32 %v913_v8, %v912_v5  ;;  %v903_v42 = vadd.f32 %v902_v44, %v901_v6 }
 0x1e6   : > { %v927_v7 = vadd.f32 %v926_v2, %v925_v62  ;;  %1190 = vpush %v903_v42  ;;  %v915_v11 = vrot.slane %v914_v9, 1 }
 0x1e8   : > { %v928_v10 = vrot.slane %v927_v7, 1  ;;  %v916_v12 = vadd.f32 %v915_v11, %v914_v9 }
 0x1ea   : > { %v929_v13 = vadd.f32 %v928_v10, %v927_v7  ;;  %1192 = vpush %v916_v12 }
 0x1ec   : > { %1194 = vpush %v929_v13 }
 0x217   : > { %s1191_s25 = spop %1190 }
 0x218   : > { %v905_v14 = vstv %s1191_s25 }
 0x219   : > { %906 = vst [vmem:[%s399_s2] sm:$0xff] %v905_v14 }
 0x21a   : > { %1309 = shalt.err (!%p1306_p11)
}
 0x21b   : > { %s1310_s2 = scalar_lea.hbm %s1723_s21, 128  ;;  %s1314_s20 = scalar_lea.hbm %s1848_s7, 256 }
 0x21c   : > { %p1311_p12 = scmp.ne.s32.totalorder %s1723_s21, %s1310_s2  ;;  %p1315_p2 = scmp.lt.s32.totalorder %s1723_s21, %s1848_s7 }
 0x21d   : > { %p1316_p3 = scmp.lt.s32.totalorder %s1314_s20, %s1310_s2 }
 0x21e   : > { %p1312_p13 = pnand %p1311_p12, %p1538_p0 }
 0x21f   : > { %p1317_p5 = por %p1316_p3, %p1315_p2 }
 0x220   : > { %p1313_p1 = pneg %p1312_p13 }
 0x222   : > { %p1318_p6 = pnand %p1317_p5, %p1313_p1 }
 0x224   : > { %1321 = shalt.err (!%p1318_p6)
}
 0x225   : > { %1196 = dma.vmem_to_hbm [thread:$0]  (%p1538_p0), %s1725_s16, 128, %s1723_s21, %s934_s11  }
 0x226   : > { %s1193_s17 = spop %1192  ;;  %s1765_s10 = scalar_lea.hbm %s1850_s9, %s1709_s30 }
 0x227   : > { %v918_v15 = vstv %s1193_s17  ;;  %s1195_s2 = spop %1194  ;;  %s939_s28 = scalar_lea.sflag [#allocation11], %s1715_s14 }
 0x228   : > { %919 = vst [vmem:[%s406_s1] sm:$0xff] %v918_v15  ;;  %v931_v16 = vstv %s1195_s2  ;;  %s1322_s25 = scalar_lea.vmem %s1735_s23, 128  ;;  %s1438_s16 = smov [#allocation10]  }
 0x229   : > { %932 = vst [vmem:[%s413_s24] sm:$0xff] %v931_v16  ;;  %p1323_p7 = scmp.ne.s32.totalorder %s1735_s23, %s1322_s25  ;;  %s1326_s21 = sshll.u32 %s1438_s16, 4  ;;  %s1327_s21 = int_to_ptr.vmem [resolvable:$false] %s1326_s21 }
 0x22a   : > { %s1328_s30 = scalar_lea.vmem %s1327_s21, 256  ;;  %p1329_p10 = scmp.lt.s32.totalorder %s1735_s23, %s1327_s21 }
 0x22b   : > { %p1324_p8 = pnand %p1323_p7, %p1538_p0  ;;  %p1330_p11 = scmp.lt.s32.totalorder %s1328_s30, %s1322_s25 }
 0x22d   : > { %p1325_p9 = pneg %p1324_p8  ;;  %p1331_p12 = por %p1330_p11, %p1329_p10 }
 0x22f   : > { %p1332_p13 = pnand %p1331_p12, %p1325_p9 }
 0x231   : > { %1335 = shalt.err (!%p1332_p13)
}
 0x232   : > { %s1336_s1 = scalar_lea.hbm %s1731_s29, 128  ;;  %s1340_s11 = scalar_lea.hbm %s1849_s8, 256 }
 0x233   : > { %p1337_p1 = scmp.ne.s32.totalorder %s1731_s29, %s1336_s1  ;;  %p1341_p5 = scmp.lt.s32.totalorder %s1731_s29, %s1849_s8 }
 0x234   : > { %p1342_p6 = scmp.lt.s32.totalorder %s1340_s11, %s1336_s1 }
 0x235   : > { %p1338_p2 = pnand %p1337_p1, %p1538_p0 }
 0x236   : > { %p1343_p7 = por %p1342_p6, %p1341_p5 }
 0x237   : > { %p1339_p3 = pneg %p1338_p2 }
 0x239   : > { %p1344_p8 = pnand %p1343_p7, %p1339_p3 }
 0x23b   : > { %1347 = shalt.err (!%p1344_p8)
}
 0x23c   : > { %1197 = dma.vmem_to_hbm [thread:$0]  (%p1538_p0), %s1735_s23, 128, %s1731_s29, %s939_s28  }
 0x23d   : > { %s1348_s13 = scalar_lea.vmem %s1767_s15, 128  ;;  %s1439_s17 = smov [#allocation12]  }
 0x23e   : > { %p1349_p9 = scmp.ne.s32.totalorder %s1767_s15, %s1348_s13  ;;  %s1352_s0 = sshll.u32 %s1439_s17, 4  ;;  %s1353_s0 = int_to_ptr.vmem [resolvable:$false] %s1352_s0 }
 0x23f   : > { %s1354_s26 = scalar_lea.vmem %s1353_s0, 256  ;;  %p1355_p12 = scmp.lt.s32.totalorder %s1767_s15, %s1353_s0 }
 0x240   : > { %p1350_p10 = pnand %p1349_p9, %p1538_p0  ;;  %p1356_p13 = scmp.lt.s32.totalorder %s1354_s26, %s1348_s13 }
 0x242   : > { %p1351_p11 = pneg %p1350_p10  ;;  %p1357_p1 = por %p1356_p13, %p1355_p12 }
 0x244   : > { %p1358_p2 = pnand %p1357_p1, %p1351_p11 }
 0x246   : > { %1361 = shalt.err (!%p1358_p2)
}
 0x247   : > { %s1362_s2 = scalar_lea.hbm %s1765_s10, 128  ;;  %s1366_s25 = scalar_lea.hbm %s1850_s9, 256 }
 0x248   : > { %p1363_p3 = scmp.ne.s32.totalorder %s1765_s10, %s1362_s2  ;;  %p1367_p7 = scmp.lt.s32.totalorder %s1765_s10, %s1850_s9 }
 0x249   : > { %p1368_p8 = scmp.lt.s32.totalorder %s1366_s25, %s1362_s2 }
 0x24a   : > { %p1364_p5 = pnand %p1363_p3, %p1538_p0 }
 0x24b   : > { %p1369_p9 = por %p1368_p8, %p1367_p7 }
 0x24c   : > { %p1365_p6 = pneg %p1364_p5 }
 0x24e   : > { %p1370_p10 = pnand %p1369_p9, %p1365_p6 }
 0x250   : > { %1373 = shalt.err (!%p1370_p10)
}
 0x251   : > { %1198 = dma.vmem_to_hbm [thread:$0]  (%p1538_p0), %s1767_s15, 128, %s1765_s10, %s939_s28  }
 0x252 PF: > { %s1873_s30 = sld [smem:[#allocation16_spill]]  ;;  %p1212_p11 = scmp.ge.s32.totalorder %s1430_s22, 2 }
 0x254   : > { %p1203_p12 = pnand %p1212_p11, %p1547_p4 }
 0x256   : > { %p1204_p13 = pneg %p1203_p12 }
 0x258   : > { %s995_s12 = sand.u32 1, %s1873_s30  }
 0x259   : > { %s996_s24 = scalar_lea.sflag [#allocation9], %s995_s12 }
 0x25a   : > { %1401 = dma.done.wait (%p1204_p13), %s996_s24, 128  }
 0x25b   : > { %1403 = vsyncadd (%p1204_p13), %s996_s24, 4294967168  ;;  %s1875_s11 = sadd.s32 4294967294, %s1430_s22  }
 0x25c   : > { %s1004_s27 = sand.u32 1, %s1875_s11  }
 0x25d   : > { %s1005_s20 = scalar_lea.sflag [#allocation11], %s1004_s27 }
 0x25e   : > { %1405 = dma.done.wait (%p1204_p13), %s1005_s20, 256  }
 0x25f   : > { %1407 = vsyncadd (%p1204_p13), %s1005_s20, 4294967040  ;;  %s36_s22 = sadd.s32 1, %s1430_s22   ;;  %s1876_s14 = sld [smem:[#allocation17_spill]] }
 0x260   : > { %p33_p0 = scmp.ge.s32.totalorder %s36_s22, 4   ;;  %s1877_s19 = sld [smem:[#allocation21_spill]] }
 0x261   : > { %s1878_s20 = sld [smem:[#allocation18_spill]]  ;;  %s1880_s1 = smov %s1414_s18 }
 0x262   : > { %s1879_s21 = sld [smem:[#allocation19_spill]]  ;;  %35 = sbr.rel (!%p33_p0) target bundleno = 32 (0x20), region = 135 }
 0x265   : > { %s1881_s18 = smov %s1876_s14 }
 0x267   :  { %1019 = vsyncpa [#allocation9], 1 }
 0x268   :  { %1021 = vsyncpa [#allocation9 + $0x1], 1 }
 0x269   :  { %1022 = vsyncpa [#allocation11], 1 }
 0x26a   :  { %1024 = vsyncpa [#allocation11 + $0x1], 1 }

</bundles_post_ra>
